<compile_context>
chip_gen: v6e
topology: v6e:2x2x1
jax: 0.10.0
libtpu: 0.0.40
codegen_flags: <defaults>
</compile_context>

<pallas_src>
import functools

import jax
import jax.numpy as jnp
import numpy as np
from jax.experimental import pallas as pl
from jax.experimental.pallas import tpu as pltpu  # noqa: F401  (TPU backend)


# -----------------------------------------------------------------------------
# Fused kernel: conv1 + (bias-1) + relu + conv2 + (bias-1) + relu.
# Single invocation; everything resident in VMEM; 5 MXU matmuls total.
# -----------------------------------------------------------------------------
def _fused_conv_kernel(x_ref, c_ref, sel2_ref, o_ref, *,
                       kh, k1, k2, wc1, wc2, b1_off, b2_off):
    # x_ref   : (N*H, kh*W*Cin)  pre-shifted input rows (vertical taps in lanes)
    # c_ref   : (Rc, LANES)      packed constants:
    #             rows [0, k1)       band1  (kh*W*Cin, W*C1)
    #             rows [k1, k1+k2)   band2  (kh*W*C1, Wo*C2)
    #             row  b1_off        conv1 bias with the graph's "-1" folded in
    #             row  b2_off        conv2 bias with the graph's "-1" folded in
    # sel2_ref: (kh, N*Ho, N*H)  0/1 row selection (vertical tap / pad / stride
    #                            / batch block-diagonal) for conv2
    # o_ref   : (N*Ho, Wo*C2)    lane-dense output (last dim = 128)
    x = x_ref[...]
    band1 = c_ref[0:k1, 0:wc1]
    band2 = c_ref[k1:k1 + k2, 0:wc2]
    b1 = c_ref[b1_off:b1_off + 1, 0:wc1]
    b2 = c_ref[b2_off:b2_off + 1, 0:wc2]

    # ---- conv1 + (bias - 1) + relu : ONE matmul --------------------------------
    v3 = jnp.maximum(
        jnp.dot(x, band1, preferred_element_type=jnp.float32) + b1, 0.0)

    # ---- conv2 (stride 2) + (bias - 1) + relu : 3 row-select matmuls + 1 band --
    gathered = jnp.concatenate(
        [jnp.dot(sel2_ref[di], v3, preferred_element_type=jnp.float32)
         for di in range(kh)],
        axis=1)                                              # (N*Ho, kh*W*C1)
    out = jnp.dot(gathered, band2, preferred_element_type=jnp.float32) + b2
    o_ref[...] = jnp.maximum(out, 0.0).astype(o_ref.dtype)


# -----------------------------------------------------------------------------
# One-time (numpy) weight preprocessing
# -----------------------------------------------------------------------------
def _banded_weights_np(w_oihw, in_w, out_w, stride, pad):
    """(kh, in_w*Cin, out_w*Cout) width-banded weight matrix per vertical tap.

    For a fixed vertical tap di, (row @ band[di]) applies all kw horizontal
    taps and the channel mixing; width zero-padding is folded in by dropping
    out-of-range taps."""
    w = np.asarray(w_oihw, dtype=np.float32)
    Cout, Cin, kh, kw = w.shape
    w_hwio = np.transpose(w, (2, 3, 1, 0))                   # (kh, kw, Cin, Cout)
    band = np.zeros((kh, in_w * Cin, out_w * Cout), np.float32)
    for di in range(kh):
        for wo in range(out_w):
            for dj in range(kw):
                wi = wo * stride + dj - pad
                if 0 <= wi < in_w:
                    band[di, wi * Cin:(wi + 1) * Cin,
                         wo * Cout:(wo + 1) * Cout] = w_hwio[di, dj]
    return band


def _row_select_np(kh, out_h, in_h, stride, pad, nbatch):
    """(kh, nbatch*out_h, nbatch*in_h) 0/1 block-diagonal row-selection matrices."""
    sel = np.zeros((kh, nbatch * out_h, nbatch * in_h), np.float32)
    for di in range(kh):
        for n in range(nbatch):
            for ho in range(out_h):
                r = ho * stride + di - pad
                if 0 <= r < in_h:
                    sel[di, n * out_h + ho, n * in_h + r] = 1.0
    return sel


def make_model(params, input_shape):
    """Precompute all weight-derived constants ONCE; return a jitted forward."""
    N, Cin, H, W = input_shape
    w1 = np.asarray(params["w1"], np.float32)
    b1 = np.asarray(params["b1"], np.float32)
    w2 = np.asarray(params["w2"], np.float32)
    b2 = np.asarray(params["b2"], np.float32)
    C1, _, kh, kw = w1.shape
    C2 = w2.shape[0]
    s1, p1 = 1, 1                         # conv1 stride / padding (module spec)
    s2, p2 = 2, 1                         # conv2 stride / padding (module spec)
    H1 = (H + 2 * p1 - kh) // s1 + 1      # conv1 output spatial (== H, == W here)
    W1 = (W + 2 * p1 - kw) // s1 + 1
    Ho = (H1 + 2 * p2 - kh) // s2 + 1
    Wo = (W1 + 2 * p2 - kw) // s2 + 1

    k1, wc1 = kh * W * Cin, W1 * C1       # band1: (144, 128)
    k2, wc2 = kh * W1 * C1, Wo * C2       # band2: (384, 128)
    lanes = max(wc1, wc2)
    b1_off = ((k1 + k2 + 7) // 8) * 8     # sublane-aligned bias rows
    b2_off = b1_off + 8
    n_rows = b2_off + 8

    consts = np.zeros((n_rows, lanes), np.float32)
    consts[0:k1, 0:wc1] = _banded_weights_np(w1, W, W1, s1, p1).reshape(k1, wc1)
    consts[k1:k1 + k2, 0:wc2] = _banded_weights_np(w2, W1, Wo, s2, p2).reshape(k2, wc2)
    consts[b1_off, 0:wc1] = np.tile(b1 - 1.0, W1)     # graph's "-1" folded in
    consts[b2_off, 0:wc2] = np.tile(b2 - 1.0, Wo)
    consts = jnp.asarray(consts)
    sel2 = jnp.asarray(_row_select_np(kh, Ho, H1, s2, p2, N))

    kernel = functools.partial(_fused_conv_kernel, kh=kh, k1=k1, k2=k2,
                               wc1=wc1, wc2=wc2, b1_off=b1_off, b2_off=b2_off)

    @jax.jit
    def forward(x_nchw):
        # NCHW -> rows=(batch*height), lanes=(vertical tap, width, channel).
        # The height zero-padding of conv1 is applied here; all of this fuses
        # into one tiny XLA fusion under jit (the kernel does the real work).
        x_nhwc = jnp.transpose(x_nchw.astype(jnp.float32), (0, 2, 3, 1))
        x_rows = x_nhwc.reshape(N, H, W * Cin)
        x_pad = jnp.pad(x_rows, ((0, 0), (p1, p1), (0, 0)))
        x_shift = jnp.concatenate(
            [x_pad[:, di:di + H1, :] for di in range(kh)],
            axis=-1).reshape(N * H1, k1)

        out_rows = pl.pallas_call(
            kernel,
            out_shape=jax.ShapeDtypeStruct((N * Ho, wc2), jnp.float32),
            grid=(1,),
            in_specs=[
                pl.BlockSpec((N * H1, k1), lambda i: (0, 0)),
                pl.BlockSpec((n_rows, lanes), lambda i: (0, 0)),
                pl.BlockSpec((kh, N * Ho, N * H1), lambda i: (0, 0, 0)),
            ],
            out_specs=pl.BlockSpec((N * Ho, wc2), lambda i: (0, 0)),
        )(x_shift, consts, sel2)

        # rows -> NHWC -> NCHW (tiny; fused under jit)
        return jnp.transpose(out_rows.reshape(N, Ho, Wo, C2), (0, 3, 1, 2))

    return forward


# -----------------------------------------------------------------------------
# Pure-JAX reference (lax conv) for the correctness cross-check
# -----------------------------------------------------------------------------
def _reference_forward(x_nchw, params):
    def conv(x, w, b, stride):
        y = jax.lax.conv_general_dilated(
            x, w, window_strides=(stride, stride), padding=((1, 1), (1, 1)),
            dimension_numbers=("NCHW", "OIHW", "NCHW"))
        return jnp.maximum(y + b.reshape(1, -1, 1, 1) - 1.0, 0.0)
    v3 = conv(x_nchw, params["w1"], params["b1"], 1)
    return conv(v3, params["w2"], params["b2"], 2)


if __name__ == "__main__":
    key = jax.random.PRNGKey(0)
    kx, kw1, kb1, kw2, kb2 = jax.random.split(key, 5)

    # Small shapes consistent with the module: N=2, Cin=3, H=W=16
    x = jax.random.normal(kx, (2, 3, 16, 16), dtype=jnp.float32)

    params = {
        "w1": 0.1 * jax.random.normal(kw1, (8, 3, 3, 3), dtype=jnp.float32),
        "b1": 0.1 * jax.random.normal(kb1, (8,), dtype=jnp.float32),
        "w2": 0.1 * jax.random.normal(kw2, (16, 8, 3, 3), dtype=jnp.float32),
        "b2": 0.1 * jax.random.normal(kb2, (16,), dtype=jnp.float32),
    }

    forward = make_model(params, x.shape)      # one-time weight preprocessing
    out = jax.block_until_ready(forward(x))
    ref = jax.block_until_ready(_reference_forward(x, params))

    assert out.shape == (2, 16, 8, 8), out.shape
    np.testing.assert_allclose(np.asarray(out), np.asarray(ref),
                               atol=1e-4, rtol=1e-4)
    print("KERNEL_OK")
</pallas_src>

<mosaic_0001>
module attributes {stable_mosaic.version = 11 : i64} {
  func.func @_fused_conv_kernel(%arg0: i32, %arg1: memref<32x144xf32, #tpu.memory_space<vmem>>, %arg2: memref<544x128xf32, #tpu.memory_space<vmem>>, %arg3: memref<3x16x32xf32, #tpu.memory_space<vmem>>, %arg4: memref<16x128xf32, #tpu.memory_space<vmem>>) attributes {dimension_semantics = [#tpu.dimension_semantics<arbitrary>], iteration_bounds = array<i64: 1>, scalar_prefetch = 0 : i64, scratch_operands = 0 : i64, tpu.core_type = #tpu.core_type<tc>, window_params = [{pipeline_mode = #tpu.pipeline_mode<synchronous>, transform_indices = @transform_0, window_bounds = array<i64: 32, 144>}, {pipeline_mode = #tpu.pipeline_mode<synchronous>, transform_indices = @transform_1, window_bounds = array<i64: 544, 128>}, {pipeline_mode = #tpu.pipeline_mode<synchronous>, transform_indices = @transform_2, window_bounds = array<i64: 3, 16, 32>}, {pipeline_mode = #tpu.pipeline_mode<synchronous>, transform_indices = @transform_3, window_bounds = array<i64: 16, 128>}]} {
    %c0 = arith.constant 0 : index
    %c0_0 = arith.constant 0 : index
    %0 = vector.load %arg1[%c0, %c0_0] : memref<32x144xf32, #tpu.memory_space<vmem>>, vector<32x144xf32>
    %c0_1 = arith.constant 0 : index
    %c0_2 = arith.constant 0 : index
    %1 = vector.load %arg2[%c0_1, %c0_2] : memref<544x128xf32, #tpu.memory_space<vmem>>, vector<144x128xf32>
    %c144 = arith.constant 144 : index
    %c0_3 = arith.constant 0 : index
    %2 = vector.load %arg2[%c144, %c0_3] : memref<544x128xf32, #tpu.memory_space<vmem>>, vector<384x128xf32>
    %c528 = arith.constant 528 : index
    %c0_4 = arith.constant 0 : index
    %3 = vector.load %arg2[%c528, %c0_4] : memref<544x128xf32, #tpu.memory_space<vmem>>, vector<1x128xf32>
    %c536 = arith.constant 536 : index
    %c0_5 = arith.constant 0 : index
    %4 = vector.load %arg2[%c536, %c0_5] : memref<544x128xf32, #tpu.memory_space<vmem>>, vector<1x128xf32>
    %cst = arith.constant dense<0.000000e+00> : vector<32x128xf32>
    %5 = tpu.matmul %0, %1, %cst {dimension_numbers = #tpu.dot_dimension_numbers<[1], [0], [0], [1], [0, 0, 1, 1], [], []>} : vector<32x144xf32>, vector<144x128xf32>, vector<32x128xf32> -> vector<32x128xf32>
    %6 = vector.broadcast %3 : vector<1x128xf32> to vector<32x128xf32>
    %7 = arith.addf %5, %6 : vector<32x128xf32>
    %cst_6 = arith.constant 0.000000e+00 : f32
    %8 = vector.broadcast %cst_6 : f32 to vector<32x128xf32>
    %9 = arith.maximumf %7, %8 : vector<32x128xf32>
    %c0_7 = arith.constant 0 : index
    %c0_8 = arith.constant 0 : index
    %c0_9 = arith.constant 0 : index
    %10 = vector.load %arg3[%c0_7, %c0_8, %c0_9] : memref<3x16x32xf32, #tpu.memory_space<vmem>>, vector<1x16x32xf32>
    %11 = vector.shape_cast %10 : vector<1x16x32xf32> to vector<16x32xf32>
    %cst_10 = arith.constant dense<0.000000e+00> : vector<16x128xf32>
    %12 = tpu.matmul %11, %9, %cst_10 {dimension_numbers = #tpu.dot_dimension_numbers<[1], [0], [0], [1], [0, 0, 1, 1], [], []>} : vector<16x32xf32>, vector<32x128xf32>, vector<16x128xf32> -> vector<16x128xf32>
    %c1 = arith.constant 1 : index
    %c0_11 = arith.constant 0 : index
    %c0_12 = arith.constant 0 : index
    %13 = vector.load %arg3[%c1, %c0_11, %c0_12] : memref<3x16x32xf32, #tpu.memory_space<vmem>>, vector<1x16x32xf32>
    %14 = vector.shape_cast %13 : vector<1x16x32xf32> to vector<16x32xf32>
    %cst_13 = arith.constant dense<0.000000e+00> : vector<16x128xf32>
    %15 = tpu.matmul %14, %9, %cst_13 {dimension_numbers = #tpu.dot_dimension_numbers<[1], [0], [0], [1], [0, 0, 1, 1], [], []>} : vector<16x32xf32>, vector<32x128xf32>, vector<16x128xf32> -> vector<16x128xf32>
    %c2 = arith.constant 2 : index
    %c0_14 = arith.constant 0 : index
    %c0_15 = arith.constant 0 : index
    %16 = vector.load %arg3[%c2, %c0_14, %c0_15] : memref<3x16x32xf32, #tpu.memory_space<vmem>>, vector<1x16x32xf32>
    %17 = vector.shape_cast %16 : vector<1x16x32xf32> to vector<16x32xf32>
    %cst_16 = arith.constant dense<0.000000e+00> : vector<16x128xf32>
    %18 = tpu.matmul %17, %9, %cst_16 {dimension_numbers = #tpu.dot_dimension_numbers<[1], [0], [0], [1], [0, 0, 1, 1], [], []>} : vector<16x32xf32>, vector<32x128xf32>, vector<16x128xf32> -> vector<16x128xf32>
    %19 = tpu.concatenate %12, %15, %18 in 1 : vector<16x128xf32>, vector<16x128xf32>, vector<16x128xf32> -> vector<16x384xf32>
    %cst_17 = arith.constant dense<0.000000e+00> : vector<16x128xf32>
    %20 = tpu.matmul %19, %2, %cst_17 {dimension_numbers = #tpu.dot_dimension_numbers<[1], [0], [0], [1], [0, 0, 1, 1], [], []>} : vector<16x384xf32>, vector<384x128xf32>, vector<16x128xf32> -> vector<16x128xf32>
    %21 = vector.broadcast %4 : vector<1x128xf32> to vector<16x128xf32>
    %22 = arith.addf %20, %21 : vector<16x128xf32>
    %cst_18 = arith.constant 0.000000e+00 : f32
    %23 = vector.broadcast %cst_18 : f32 to vector<16x128xf32>
    %24 = arith.maximumf %22, %23 : vector<16x128xf32>
    %c0_19 = arith.constant 0 : index
    %c0_20 = arith.constant 0 : index
    %25 = vector.load %arg4[%c0_19, %c0_20] : memref<16x128xf32, #tpu.memory_space<vmem>>, vector<16x128xf32>
    tpu.vector_store %arg4[%c0_19, %c0_20], %24 {strides = array<i32>} : memref<16x128xf32, #tpu.memory_space<vmem>>, vector<16x128xf32>,
    return
  }
  func.func @transform_0(%arg0: i32) -> (i32, i32) {
    %c0_i32 = arith.constant 0 : i32
    %c0_i32_0 = arith.constant 0 : i32
    %c0_i32_1 = arith.constant 0 : i32
    return %c0_i32, %c0_i32_0 : i32, i32
  }
  func.func @transform_1(%arg0: i32) -> (i32, i32) {
    %c0_i32 = arith.constant 0 : i32
    %c0_i32_0 = arith.constant 0 : i32
    %c0_i32_1 = arith.constant 0 : i32
    return %c0_i32, %c0_i32_0 : i32, i32
  }
  func.func @transform_2(%arg0: i32) -> (i32, i32, i32) {
    %c0_i32 = arith.constant 0 : i32
    %c0_i32_0 = arith.constant 0 : i32
    %c0_i32_1 = arith.constant 0 : i32
    %c0_i32_2 = arith.constant 0 : i32
    return %c0_i32, %c0_i32_0, %c0_i32_1 : i32, i32, i32
  }
  func.func @transform_3(%arg0: i32) -> (i32, i32) {
    %c0_i32 = arith.constant 0 : i32
    %c0_i32_0 = arith.constant 0 : i32
    %c0_i32_1 = arith.constant 0 : i32
    return %c0_i32, %c0_i32_0 : i32, i32
  }
}

</mosaic_0001>

<bundles_post_ra>
// kernel: forward.1
= control target key start
LH: loop header
LB: loop body
LE: loop exit
PB: predicated region body
PF: predicated region fallthrough
CT: control target
= control target key end

     0   :  { %v769_v0 = vmov 0.0   ;;  %vm94_vm0 = vcmask 130048   ;;  %vm198_vm1 = vcmask 261120   ;;  %s1052_s1 = inlined_call_operand.vmem [shape: f32[544,128], index: 1, kind: input, shape index: {}]   ;;  %s1053_s0 = inlined_call_operand.vmem [shape: f32[32,144], index: 0, kind: input, shape index: {}]   ;;  %s1054_s2 = inlined_call_operand.vmem [shape: f32[3,16,32], index: 2, kind: input, shape index: {}]   ;;  %s1055_s3 = inlined_call_operand.vmem [shape: f32[16,128], index: 3, kind: output, shape index: {}]  }
   0x1   :  { %107 = vmatprep.subr.mxu0 %v769_v0  ;;  %v37_v1 = vld [vmem:[%s1052_s1 + $0x78] sm:$0xff]  ;;  %v36_v2 = vld [vmem:[%s1052_s1 + $0x70] sm:$0xff]  ;;  %v35_v3 = vld [vmem:[%s1052_s1 + $0x68] sm:$0xff] }
   0x2   :  { %108 = vmatpush1.msra.mxu0 %v37_v1  ;;  %v34_v4 = vld [vmem:[%s1052_s1 + $0x60] sm:$0xff]  ;;  %v33_v5 = vld [vmem:[%s1052_s1 + $0x58] sm:$0xff]  ;;  %v15_v6 = vld [vmem:[%s1053_s0 + $0x8] sm:$0xff] }
   0x3   :  { %109 = vmatprep.subr.mxu0 %v769_v0  ;;  %611 = vmatprep.mubr.msk.f32.mxu0 %vm94_vm0, %v15_v6  ;;  %v32_v7 = vld [vmem:[%s1052_s1 + $0x50] sm:$0xff]  ;;  %v31_v8 = vld [vmem:[%s1052_s1 + $0x48] sm:$0xff]  ;;  %v30_v9 = vld [vmem:[%s1052_s1 + $0x40] sm:$0xff] }
   0x4   :  { %110 = vmatpush1.msra.mxu0 %v36_v2  ;;  %v29_v10 = vld [vmem:[%s1052_s1 + $0x38] sm:$0xff]  ;;  %v28_v11 = vld [vmem:[%s1052_s1 + $0x30] sm:$0xff]  ;;  %v27_v12 = vld [vmem:[%s1052_s1 + $0x28] sm:$0xff] }
   0x5   :  { %111 = vmatprep.subr.mxu0 %v769_v0  ;;  %v26_v13 = vld [vmem:[%s1052_s1 + $0x20] sm:$0xff]  ;;  %v25_v14 = vld [vmem:[%s1052_s1 + $0x18] sm:$0xff]  ;;  %v24_v15 = vld [vmem:[%s1052_s1 + $0x10] sm:$0xff] }
   0x6   :  { %112 = vmatpush1.msra.mxu0 %v35_v3  ;;  %v23_v16 = vld [vmem:[%s1052_s1 + $0x8] sm:$0xff]  ;;  %v22_v17 = vld [vmem:[%s1052_s1] sm:$0xff]  ;;  %v17_v21 = vld [vmem:[%s1053_s0 + $0x18] sm:$0xff] }
   0x7   :  { %113 = vmatprep.subr.mxu0 %v769_v0  ;;  %v39_v18 = vld [vmem:[%s1052_s1 + $0x88] sm:$0xff]  ;;  %v38_v19 = vld [vmem:[%s1052_s1 + $0x80] sm:$0xff]  ;;  %v16_v22 = vld [vmem:[%s1053_s0 + $0x10] sm:$0xff] }
   0x8   :  { %114 = vmatpush1.msra.mxu0 %v34_v4  ;;  %v14_v20 = vld [vmem:[%s1053_s0] sm:$0xff]  ;;  %v19_v23 = vld [vmem:[%s1053_s0 + $0x28] sm:$0xff]  ;;  %v21_v25 = vld [vmem:[%s1053_s0 + $0x38] sm:$0xff] }
   0x9   :  { %115 = vmatprep.subr.mxu0 %v769_v0  ;;  %v18_v24 = vld [vmem:[%s1053_s0 + $0x20] sm:$0xff]  ;;  %v20_v26 = vld [vmem:[%s1053_s0 + $0x30] sm:$0xff]  ;;  %v87_v28 = vld [vmem:[%s1052_s1 + $0x208] sm:$0xff] }
   0xa   :  { %116 = vmatpush1.msra.mxu0 %v33_v5  ;;  %v196_v27 = vld [vmem:[%s1054_s2] sm:$0xff]  ;;  %v85_v30 = vld [vmem:[%s1052_s1 + $0x1f8] sm:$0xff]  ;;  %v84_v31 = vld [vmem:[%s1052_s1 + $0x1f0] sm:$0xff] }
   0xb   :  { %117 = vmatprep.subr.mxu0 %v769_v0  ;;  %708 = vmatprep.mubr.msk.f32.mxu1 %vm198_vm1, %v196_v27  ;;  %v86_v29 = vld [vmem:[%s1052_s1 + $0x200] sm:$0xff]  ;;  %v83_v32 = vld [vmem:[%s1052_s1 + $0x1e8] sm:$0xff]  ;;  %v610_v40 = vld [vmem:[%s1052_s1 + $0x210] ss:$0 sm:$0xff] }
   0xc   :  { %118 = vmatpush1.msra.mxu0 %v32_v7  ;;  %v82_v33 = vld [vmem:[%s1052_s1 + $0x1e0] sm:$0xff]  ;;  %v197_v51 = vld [vmem:[%s1054_s2 + $0x8] sm:$0xff]  ;;  %v617_v52 = vld [vmem:[%s1054_s2 + $0x10] sm:$0xff] }
   0xd   :  { %119 = vmatprep.subr.mxu0 %v769_v0  ;;  %v618_v53 = vld [vmem:[%s1054_s2 + $0x18] sm:$0xff]  ;;  %v621_v54 = vld [vmem:[%s1054_s2 + $0x20] sm:$0xff]  ;;  %v622_v55 = vld [vmem:[%s1054_s2 + $0x28] sm:$0xff] }
   0xe   :  { %120 = vmatpush1.msra.mxu0 %v31_v8  ;;  %v71_v56 = vld [vmem:[%s1052_s1 + $0x188] sm:$0xff]  ;;  %v70_v58 = vld [vmem:[%s1052_s1 + $0x180] sm:$0xff]  ;;  %v69_v60 = vld [vmem:[%s1052_s1 + $0x178] sm:$0xff] }
   0xf   :  { %121 = vmatprep.subr.mxu0 %v769_v0  ;;  %v55_v57 = vld [vmem:[%s1052_s1 + $0x108] sm:$0xff]  ;;  %v54_v59 = vld [vmem:[%s1052_s1 + $0x100] sm:$0xff]  ;;  %v53_v61 = vld [vmem:[%s1052_s1 + $0xf8] sm:$0xff] }
  0x10   :  { %122 = vmatpush1.msra.mxu0 %v30_v9  ;;  %v68_v62 = vld [vmem:[%s1052_s1 + $0x170] sm:$0xff]  ;;  %v51_v1 = vld [vmem:[%s1052_s1 + $0xe8] sm:$0xff]  ;;  %v66_v2 = vld [vmem:[%s1052_s1 + $0x160] sm:$0xff] }
  0x11   :  { %123 = vmatprep.subr.mxu0 %v769_v0  ;;  %v52_v63 = vld [vmem:[%s1052_s1 + $0xf0] sm:$0xff]  ;;  %v50_v3 = vld [vmem:[%s1052_s1 + $0xe0] sm:$0xff]  ;;  %v65_v4 = vld [vmem:[%s1052_s1 + $0x158] sm:$0xff] }
  0x12   :  { %124 = vmatpush1.msra.mxu0 %v29_v10  ;;  %v49_v5 = vld [vmem:[%s1052_s1 + $0xd8] sm:$0xff]  ;;  %v64_v6 = vld [vmem:[%s1052_s1 + $0x150] sm:$0xff]  ;;  %v63_v8 = vld [vmem:[%s1052_s1 + $0x148] sm:$0xff] }
  0x13   :  { %125 = vmatprep.subr.mxu0 %v769_v0  ;;  %v48_v7 = vld [vmem:[%s1052_s1 + $0xd0] sm:$0xff]  ;;  %v47_v9 = vld [vmem:[%s1052_s1 + $0xc8] sm:$0xff]  ;;  %v62_v10 = vld [vmem:[%s1052_s1 + $0x140] sm:$0xff] }
  0x14   :  { %126 = vmatpush1.msra.mxu0 %v28_v11  ;;  %v46_v11 = vld [vmem:[%s1052_s1 + $0xc0] sm:$0xff]  ;;  %v56_v27 = vld [vmem:[%s1052_s1 + $0x110] sm:$0xff] }
  0x15   :  { %127 = vmatprep.subr.mxu0 %v769_v0 }
  0x16   :  { %128 = vmatpush1.msra.mxu0 %v27_v12  ;;  %v61_v12 = vld [vmem:[%s1052_s1 + $0x138] sm:$0xff] }
  0x17   :  { %129 = vmatprep.subr.mxu0 %v769_v0 }
  0x18   :  { %130 = vmatpush1.msra.mxu0 %v26_v13  ;;  %v81_v13 = vld [vmem:[%s1052_s1 + $0x1d8] sm:$0xff] }
  0x19   :  { %131 = vmatprep.subr.mxu0 %v769_v0 }
  0x1a   :  { %132 = vmatpush1.msra.mxu0 %v25_v14  ;;  %v45_v14 = vld [vmem:[%s1052_s1 + $0xb8] sm:$0xff] }
  0x1b   :  { %133 = vmatprep.subr.mxu0 %v769_v0 }
  0x1c   :  { %134 = vmatpush1.msra.mxu0 %v24_v15  ;;  %v60_v15 = vld [vmem:[%s1052_s1 + $0x130] sm:$0xff] }
  0x1d   :  { %135 = vmatprep.subr.mxu0 %v769_v0 }
  0x1e   :  { %136 = vmatpush1.msra.mxu0 %v23_v16  ;;  %v80_v16 = vld [vmem:[%s1052_s1 + $0x1d0] sm:$0xff] }
  0x1f   :  { %137 = vmatprep.subr.mxu0 %v769_v0 }
  0x20   :  { %138 = vmatpush1.msra.mxu0 %v22_v17  ;;  %v44_v17 = vld [vmem:[%s1052_s1 + $0xb0] sm:$0xff] }
  0x21   :  { %167 = vmatprep.subr.mxu0 %v769_v0 }
  0x22   :  { %168 = vmatpush2.msra.mxu0 %v39_v18  ;;  %v59_v18 = vld [vmem:[%s1052_s1 + $0x128] sm:$0xff] }
  0x23   :  { %169 = vmatprep.subr.mxu0 %v769_v0  ;;  %v67_v0 = vld [vmem:[%s1052_s1 + $0x168] sm:$0xff] }
  0x24   :  { %170 = vmatpush2.msra.mxu0 %v38_v19  ;;  %v79_v19 = vld [vmem:[%s1052_s1 + $0x1c8] sm:$0xff] }
  0x25   :  { %172 = vmatmul.mubr.f32.vlgmr.msra.gmra.mxu0 %v14_v20  ;;  %733 = vmatprep.subr.mxu0 %v87_v28  ;;  %v43_v20 = vld [vmem:[%s1052_s1 + $0xa8] sm:$0xff] }
  0x26   :  { %612 = vmatprep.mubr.msk.f32.mxu0 %vm94_vm0, %v17_v21  ;;  %734 = vmatpush3.msra.mxu0 %v87_v28  ;;  %v58_v21 = vld [vmem:[%s1052_s1 + $0x120] sm:$0xff]  ;;  %v76_v28 = vld [vmem:[%s1052_s1 + $0x1b0] sm:$0xff] }
  0x27   :  { %735 = vmatprep.subr.mxu0 %v86_v29 }
  0x28   :  { %736 = vmatpush3.msra.mxu0 %v86_v29  ;;  %v40_v29 = vld [vmem:[%s1052_s1 + $0x90] sm:$0xff] }
  0x29   :  { %177 = vmatmul.mubr.f32.gmra.mxu0 %v16_v22  ;;  %737 = vmatprep.subr.mxu0 %v85_v30  ;;  %v78_v22 = vld [vmem:[%s1052_s1 + $0x1c0] sm:$0xff] }
  0x2a   :  { %613 = vmatprep.mubr.msk.f32.mxu0 %vm94_vm0, %v19_v23  ;;  %738 = vmatpush3.msra.mxu0 %v85_v30  ;;  %v42_v23 = vld [vmem:[%s1052_s1 + $0xa0] sm:$0xff]  ;;  %v75_v30 = vld [vmem:[%s1052_s1 + $0x1a8] sm:$0xff] }
  0x2b   :  { %739 = vmatprep.subr.mxu0 %v84_v31 }
  0x2c   :  { %740 = vmatpush3.msra.mxu0 %v84_v31  ;;  %v74_v31 = vld [vmem:[%s1052_s1 + $0x1a0] sm:$0xff] }
  0x2d   :  { %182 = vmatmul.mubr.f32.gmra.mxu0 %v18_v24  ;;  %741 = vmatprep.subr.mxu0 %v83_v32  ;;  %v57_v24 = vld [vmem:[%s1052_s1 + $0x118] sm:$0xff] }
  0x2e   :  { %614 = vmatprep.mubr.msk.f32.mxu0 %vm94_vm0, %v21_v25  ;;  %742 = vmatpush3.msra.mxu0 %v83_v32  ;;  %v77_v25 = vld [vmem:[%s1052_s1 + $0x1b8] sm:$0xff] }
  0x2f   :  { %743 = vmatprep.subr.mxu0 %v82_v33  ;;  %v73_v32 = vld [vmem:[%s1052_s1 + $0x198] sm:$0xff] }
  0x30   :  { %744 = vmatpush3.msra.mxu0 %v82_v33  ;;  %v72_v33 = vld [vmem:[%s1052_s1 + $0x190] sm:$0xff] }
  0x31   :  { %187 = vmatmul.mubr.f32.gmra.mxu0 %v20_v26  ;;  %745 = vmatprep.subr.mxu0 %v81_v13  ;;  %v41_v26 = vld [vmem:[%s1052_s1 + $0x98] sm:$0xff] }
  0x32   :  { %746 = vmatpush3.msra.mxu0 %v81_v13 }
  0x33   :  { %747 = vmatprep.subr.mxu0 %v80_v16 }
  0x34   :  { %748 = vmatpush3.msra.mxu0 %v80_v16 }
  0x35   :  { %749 = vmatprep.subr.mxu0 %v79_v19 }
  0x36   :  { %750 = vmatpush3.msra.mxu0 %v79_v19 }
  0x37   :  { %751 = vmatprep.subr.mxu0 %v78_v22 }
  0x38   :  { %752 = vmatpush3.msra.mxu0 %v78_v22 }
  0x39   :  { %753 = vmatprep.subr.mxu0 %v77_v25 }
  0x3a   :  { %754 = vmatpush3.msra.mxu0 %v77_v25 }
  0x3b   :  { %755 = vmatprep.subr.mxu0 %v76_v28 }
  0x3c   :  { %756 = vmatpush3.msra.mxu0 %v76_v28 }
  0x3d   :  { %757 = vmatprep.subr.mxu0 %v75_v30 }
  0x3e   :  { %758 = vmatpush3.msra.mxu0 %v75_v30 }
  0x3f   :  { %759 = vmatprep.subr.mxu0 %v74_v31 }
  0x40   :  { %760 = vmatpush3.msra.mxu0 %v74_v31 }
  0x41   :  { %761 = vmatprep.subr.mxu0 %v73_v32 }
  0x42   :  { %762 = vmatpush3.msra.mxu0 %v73_v32 }
  0x43   :  { %763 = vmatprep.subr.mxu0 %v72_v33 }
  0x44   :  { %764 = vmatpush3.msra.mxu0 %v72_v33 }
  0xe5   :  { %v173_v34 = vpop.f32.mrf.mxu0 }
  0xe6   :  { %v174_v47 = vadd.f32 %v610_v40, %v173_v34 }
  0xe7   :  { %v175_v35 = vpop.f32.mrf.mxu0 }
  0xe8   :  { %v192_v50 = vmax.f32 %v174_v47, 0.0 }
  0xe9   :  { %v178_v36 = vpop.f32.mrf.mxu0 }
  0xea   :  { %v179_v45 = vadd.f32 %v610_v40, %v178_v36 }
  0xeb   :  { %v180_v37 = vpop.f32.mrf.mxu0 }
  0xec   :  { %v193_v49 = vmax.f32 %v179_v45, 0.0  ;;  %v625_v45 = vld [vmem:[%s1052_s1 + $0x218] ss:$0 sm:$0xff] }
  0xed   :  { %v183_v38 = vpop.f32.mrf.mxu0 }
  0xee   :  { %v184_v42 = vadd.f32 %v610_v40, %v183_v38 }
  0xef   :  { %v185_v39 = vpop.f32.mrf.mxu0 }
  0xf0   :  { %v194_v48 = vmax.f32 %v184_v42, 0.0 }
  0xf1   :  { %v188_v41 = vpop.f32.mrf.mxu0 }
  0xf2   :  { %v189_v43 = vadd.f32 %v610_v40, %v188_v41 }
  0xf3   :  { %v190_v44 = vpop.f32.mrf.mxu0 }
  0xf4   :  { %v195_v46 = vmax.f32 %v189_v43, 0.0 }
  0xf6   :  { %700 = vmatprep.subr.mxu1 %v195_v46 }
  0xf7   :  { %701 = vmatpush3.msra.mxu1 %v195_v46 }
  0xf8   :  { %702 = vmatprep.subr.mxu1 %v194_v48 }
  0xf9   :  { %703 = vmatpush3.msra.mxu1 %v194_v48 }
  0xfa   :  { %704 = vmatprep.subr.mxu1 %v193_v49 }
  0xfb   :  { %705 = vmatpush3.msra.mxu1 %v193_v49 }
  0xfc   :  { %706 = vmatprep.subr.mxu1 %v192_v50 }
  0xfd   :  { %707 = vmatpush3.msra.mxu1 %v192_v50 }
  0xfe   :  { %709 = vmatmul.mubr.msk.f32.vlgmr.msra.gmra.mxu1 %vm198_vm1, %v197_v51  ;;  %711 = vmatprep.subr.mxu1 %v195_v46 }
  0xff   :  { %712 = vmatpush3.msra.mxu1 %v195_v46  ;;  %719 = vmatprep.mubr.msk.f32.mxu1 %vm198_vm1, %v617_v52 }
 0x100   :  { %713 = vmatprep.subr.mxu1 %v194_v48 }
 0x101   :  { %714 = vmatpush3.msra.mxu1 %v194_v48 }
 0x102   :  { %715 = vmatprep.subr.mxu1 %v193_v49 }
 0x103   :  { %716 = vmatpush3.msra.mxu1 %v193_v49 }
 0x104   :  { %717 = vmatprep.subr.mxu1 %v192_v50 }
 0x105   :  { %718 = vmatpush3.msra.mxu1 %v192_v50 }
 0x106   :  { %720 = vmatmul.mubr.msk.f32.vlgmr.msra.gmra.mxu1 %vm198_vm1, %v618_v53  ;;  %722 = vmatprep.subr.mxu1 %v195_v46 }
 0x107   :  { %723 = vmatpush3.msra.mxu1 %v195_v46  ;;  %730 = vmatprep.mubr.msk.f32.mxu1 %vm198_vm1, %v621_v54 }
 0x108   :  { %724 = vmatprep.subr.mxu1 %v194_v48 }
 0x109   :  { %725 = vmatpush3.msra.mxu1 %v194_v48 }
 0x10a   :  { %726 = vmatprep.subr.mxu1 %v193_v49 }
 0x10b   :  { %727 = vmatpush3.msra.mxu1 %v193_v49 }
 0x10c   :  { %728 = vmatprep.subr.mxu1 %v192_v50 }
 0x10d   :  { %729 = vmatpush3.msra.mxu1 %v192_v50 }
 0x10e   :  { %731 = vmatmul.mubr.msk.f32.vlgmr.msra.gmra.mxu1 %vm198_vm1, %v622_v55  ;;  %644 = vmatprep.subr.mxu1 %v71_v56 }
 0x10f   :  { %645 = vmatpush3.msra.mxu1 %v55_v57 }
 0x110   :  { %646 = vmatprep.subr.mxu1 %v70_v58 }
 0x111   :  { %647 = vmatpush3.msra.mxu1 %v54_v59 }
 0x112   :  { %648 = vmatprep.subr.mxu1 %v69_v60 }
 0x113   :  { %649 = vmatpush3.msra.mxu1 %v53_v61 }
 0x114   :  { %650 = vmatprep.subr.mxu1 %v68_v62 }
 0x115   :  { %651 = vmatpush3.msra.mxu1 %v52_v63 }
 0x116   :  { %652 = vmatprep.subr.mxu1 %v67_v0 }
 0x117   :  { %653 = vmatpush3.msra.mxu1 %v51_v1 }
 0x118   :  { %654 = vmatprep.subr.mxu1 %v66_v2 }
 0x119   :  { %655 = vmatpush3.msra.mxu1 %v50_v3 }
 0x11a   :  { %656 = vmatprep.subr.mxu1 %v65_v4 }
 0x11b   :  { %657 = vmatpush3.msra.mxu1 %v49_v5 }
 0x11c   :  { %658 = vmatprep.subr.mxu1 %v64_v6 }
 0x11d   :  { %659 = vmatpush3.msra.mxu1 %v48_v7 }
 0x11e   :  { %660 = vmatprep.subr.mxu1 %v63_v8 }
 0x11f   :  { %661 = vmatpush3.msra.mxu1 %v47_v9 }
 0x120   :  { %662 = vmatprep.subr.mxu1 %v62_v10 }
 0x121   :  { %663 = vmatpush3.msra.mxu1 %v46_v11 }
 0x122   :  { %664 = vmatprep.subr.mxu1 %v61_v12 }
 0x123   :  { %665 = vmatpush3.msra.mxu1 %v45_v14 }
 0x124   :  { %666 = vmatprep.subr.mxu1 %v60_v15 }
 0x125   :  { %667 = vmatpush3.msra.mxu1 %v44_v17 }
 0x126   :  { %668 = vmatprep.subr.mxu1 %v59_v18 }
 0x127   :  { %669 = vmatpush3.msra.mxu1 %v43_v20 }
 0x128   :  { %670 = vmatprep.subr.mxu1 %v58_v21 }
 0x129   :  { %671 = vmatpush3.msra.mxu1 %v42_v23 }
 0x12a   :  { %672 = vmatprep.subr.mxu1 %v57_v24 }
 0x12b   :  { %673 = vmatpush3.msra.mxu1 %v41_v26 }
 0x12c   :  { %674 = vmatprep.subr.mxu1 %v56_v27 }
 0x12d   :  { %675 = vmatpush3.msra.mxu1 %v40_v29 }
 0x1be   :  { %v710_v34 = vpop.f32.mrf.mxu1 }
 0x1c0   :  { %v271_v35 = vpop.f32.mrf.mxu1 }
 0x1c6   :  { %v721_v36 = vpop.f32.mrf.mxu1 }
 0x1c8   :  { %v355_v37 = vpop.f32.mrf.mxu1 }
 0x1c9   :  { %516 = vmatprep.mubr.f32.mxu1 %v355_v37 }
 0x1ca   :  { %517 = vmatmul.mubr.f32.vlgmr.msra.gmra.mxu1 %v271_v35 }
 0x1cb   :  { %521 = vmatprep.mubr.f32.mxu1 %v721_v36 }
 0x1ce   :  { %v732_v38 = vpop.f32.mrf.mxu1  ;;  %522 = vmatmul.mubr.f32.gmra.mxu1 %v710_v34 }
 0x1d0   :  { %v439_v39 = vpop.f32.mrf.mxu1 }
 0x1d1   :  { %765 = vmatprep.mubr.f32.mxu0 %v439_v39 }
 0x1d2   :  { %766 = vmatmul.mubr.f32.vlgmr.msra.gmra.mxu0 %v732_v38 }
 0x28a   :  { %v676_v40 = vpop.f32.mrf.mxu1 }
 0x28c   :  { %v677_v41 = vpop.f32.mrf.mxu1 }
 0x28d   :  { %v678_v43 = vadd.f32 %v677_v41, %v676_v40 }
 0x28e   :  { %v679_v42 = vpop.f32.mrf.mxu1 }
 0x28f   :  { %v519_v49 = vadd.f32 %v678_v43, %v625_v45 }
 0x290   :  { %v680_v44 = vpop.f32.mrf.mxu1 }
 0x291   :  { %v681_v46 = vadd.f32 %v680_v44, %v679_v42 }
 0x292   :  { %v767_v47 = vpop.f32.mrf.mxu0 }
 0x293   :  { %v524_v48 = vadd.f32 %v681_v46, %v625_v45 }
 0x294   :  { %v593_v50 = vpop.f32.mrf.mxu0 }
 0x295   :  { %v599_v51 = vadd.f32 %v767_v47, %v524_v48  ;;  %v594_v52 = vadd.f32 %v593_v50, %v519_v49 }
 0x297   :  { %v603_v53 = vmax.f32 %v599_v51, 0.0  ;;  %v602_v54 = vmax.f32 %v594_v52, 0.0 }
 0x299   :  { %605 = vst [vmem:[%s1055_s3 + $0x8] sm:$0xff] %v603_v53  ;;  %604 = vst [vmem:[%s1055_s3] sm:$0xff] %v602_v54 }

</bundles_post_ra>
